<compile_context>
chip_gen: v6e
topology: v6e:2x2x1
jax: 0.10.0
libtpu: 0.0.40
codegen_flags: <defaults>
</compile_context>

<pallas_src>
import jax
import jax.numpy as jnp
from jax.experimental import pallas as pl
from jax.experimental.pallas import tpu as pltpu


def _attn_concat_kernel(w_ref, b_ref, x1_ref, x2_ref, x3_ref, out_ref):
    """One batch-block grid step.

    w_ref  : (1, D)          f32   VMEM  -- nn.Linear(D, 1).weight
    b_ref  : (1,)            f32   SMEM  -- nn.Linear(D, 1).bias
    x*_ref : (TB, S, D)      native VMEM -- batch block of each input
    out_ref: (TB, 3, S, D)   native VMEM -- batch block of the stacked output
    """
    w = w_ref[...]                      # (1, D) f32, broadcasts over (TB, S, D)
    b = b_ref[0]                        # f32 scalar from SMEM

    def weighted(x_ref):
        x = x_ref[...]                                           # (TB, S, D) native
        xf = x.astype(jnp.float32)
        # Linear(D -> 1): VPU multiply + cross-lane (XLU) reduction, no MXU.
        logits = jnp.sum(xf * w, axis=-1, keepdims=True) + b     # (TB, S, 1) f32
        # Softmax over the sequence axis (dim=1 of the original (B, S, 1)).
        m = jnp.max(logits, axis=1, keepdims=True)               # (TB, 1, 1)
        e = jnp.exp(logits - m)                                  # (TB, S, 1)
        denom = jnp.sum(e, axis=1, keepdims=True)                # (TB, 1, 1)
        attn = e * pl.reciprocal(denom, approx=True)             # (TB, S, 1) f32
        # Final scaling multiply in the native dtype (bf16 VALU on v6e/v7x).
        return (x * attn.astype(x.dtype)).astype(out_ref.dtype)  # (TB, S, D)

    out_ref[:, 0, :, :] = weighted(x1_ref)
    out_ref[:, 1, :, :] = weighted(x2_ref)
    out_ref[:, 2, :, :] = weighted(x3_ref)


def _vmem_budget_bytes():
    """Usable scoped-VMEM budget for this kernel, generation aware."""
    try:
        capacity = int(pltpu.get_tpu_info().vmem_capacity_bytes)
    except Exception:
        capacity = 64 * 1024 * 1024          # conservative fallback (v7x physical VMEM)
    # Leave headroom for compiler-internal scratch: ~100 MiB on 128 MiB chips
    # (v5e/v6e), ~51 MiB on 64 MiB chips (v7x).
    budget = min(int(capacity * 0.8), capacity - 12 * 1024 * 1024)
    return max(budget, 16 * 1024 * 1024)


def attention_concatenation(x1, x2, x3, weight, bias):
    """weight: (1, D), bias: (1,) -- same shapes as nn.Linear(input_dim, 1)."""
    B, S, D = x1.shape
    out_dtype = x1.dtype
    itemsize = jnp.dtype(out_dtype).itemsize

    budget = _vmem_budget_bytes()

    def bytes_per_step(tb):
        slab = tb * S * D
        # 3 input slabs + one 3-wide output slab, double-buffered by the pipeline,
        # plus the in-kernel f32 temporaries (x_f32, x_f32*w, reductions, slack).
        pipeline = 2 * (3 + 3) * slab * itemsize
        temps = 4 * slab * 4
        return pipeline + temps + (1 << 20)

    # Largest divisor of B whose step fits the VMEM budget, while keeping at
    # least 2 grid steps when B >= 2 so the v7x megacore can shard the batch axis.
    max_tb = B if B == 1 else B // 2
    tb = 1
    for cand in range(max_tb, 0, -1):
        if B % cand == 0 and bytes_per_step(cand) <= budget:
            tb = cand
            break
    # TODO(synk): if bytes_per_step(1) > budget (huge S*D), sequence tiling with
    # an online/two-pass softmax is required; we fall through with tb=1.

    grid_spec = pltpu.PrefetchScalarGridSpec(
        num_scalar_prefetch=0,
        grid=(B // tb,),
        in_specs=[
            # weight: block index never changes -> fetched once total.
            pl.BlockSpec((1, D), lambda i: (0, 0)),
            # bias: scalar parameter in SMEM (no per-step VMEM DMA).
            pl.BlockSpec(memory_space=pltpu.MemorySpace.SMEM),
            # x1/x2/x3: one batch block of each input per step.
            pl.BlockSpec((tb, S, D), lambda i: (i, 0, 0)),
            pl.BlockSpec((tb, S, D), lambda i: (i, 0, 0)),
            pl.BlockSpec((tb, S, D), lambda i: (i, 0, 0)),
        ],
        out_specs=pl.BlockSpec((tb, 3, S, D), lambda i: (i, 0, 0, 0)),
    )

    out = pl.pallas_call(
        _attn_concat_kernel,
        out_shape=jax.ShapeDtypeStruct((B, 3, S, D), out_dtype),
        grid_spec=grid_spec,
        compiler_params=pltpu.CompilerParams(
            dimension_semantics=("parallel",),
            vmem_limit_bytes=int(budget),
        ),
    )(
        weight.astype(jnp.float32),
        bias.astype(jnp.float32).reshape(1),
        x1, x2, x3,
    )

    # (B, 3, S, D) -> (B, 3S, D): contiguous reshape, free.
    return out.reshape(B, 3 * S, D)


attention_concatenation_jit = jax.jit(attention_concatenation)


def _reference(x1, x2, x3, weight, bias):
    def one(x):
        xf = x.astype(jnp.float32)
        logits = jnp.einsum("bsd,od->bso", xf, weight.astype(jnp.float32)) + bias
        attn = jax.nn.softmax(logits, axis=1)
        return xf * attn
    return jnp.concatenate([one(x1), one(x2), one(x3)], axis=1)


if __name__ == "__main__":
    B, S, D = 2, 8, 32

    key = jax.random.PRNGKey(0)
    k1, k2, k3, kw, kb = jax.random.split(key, 5)

    x1 = jax.random.normal(k1, (B, S, D), dtype=jnp.float32)
    x2 = jax.random.normal(k2, (B, S, D), dtype=jnp.float32)
    x3 = jax.random.normal(k3, (B, S, D), dtype=jnp.float32)

    # Deterministic parameter init (nn.Linear(input_dim, 1) shapes).
    bound = 1.0 / jnp.sqrt(jnp.float32(D))
    weight = jax.random.uniform(kw, (1, D), minval=-bound, maxval=bound,
                                dtype=jnp.float32)
    bias = jax.random.uniform(kb, (1,), minval=-bound, maxval=bound,
                              dtype=jnp.float32)

    ref = _reference(x1, x2, x3, weight, bias)

    # f32 I/O path (tolerance accounts for the approx EUP reciprocal).
    out = jax.block_until_ready(attention_concatenation_jit(x1, x2, x3, weight, bias))
    assert out.shape == (B, 3 * S, D)
    assert out.dtype == x1.dtype
    assert jnp.allclose(out, ref, atol=1e-2, rtol=1e-2), \
        float(jnp.max(jnp.abs(out - ref)))

    # Native bf16 I/O path: no wrapper up-cast, output stays bf16.
    x1b, x2b, x3b = (x.astype(jnp.bfloat16) for x in (x1, x2, x3))
    out_b = jax.block_until_ready(
        attention_concatenation_jit(x1b, x2b, x3b, weight, bias))
    assert out_b.dtype == jnp.bfloat16
    assert jnp.allclose(out_b.astype(jnp.float32), ref, atol=5e-2, rtol=5e-2), \
        float(jnp.max(jnp.abs(out_b.astype(jnp.float32) - ref)))

    print("KERNEL_OK")
</pallas_src>

<mosaic_0001>
module attributes {stable_mosaic.version = 11 : i64} {
  func.func @_attn_concat_kernel(%arg0: i32, %arg1: memref<1x32xf32, #tpu.memory_space<vmem>>, %arg2: memref<1xf32, #tpu.memory_space<smem>>, %arg3: memref<1x8x32xf32, #tpu.memory_space<vmem>>, %arg4: memref<1x8x32xf32, #tpu.memory_space<vmem>>, %arg5: memref<1x8x32xf32, #tpu.memory_space<vmem>>, %arg6: memref<1x3x8x32xf32, #tpu.memory_space<vmem>>) attributes {dimension_semantics = [#tpu.dimension_semantics<parallel>], iteration_bounds = array<i64: 2>, scalar_prefetch = 0 : i64, scratch_operands = 0 : i64, tpu.core_type = #tpu.core_type<tc>, window_params = [{pipeline_mode = #tpu.pipeline_mode<synchronous>, transform_indices = @transform_0, window_bounds = array<i64: 1, 32>}, {transform_indices = @transform_1, window_bounds = array<i64: 1>}, {transform_indices = @transform_2, window_bounds = array<i64: 1, 8, 32>}, {transform_indices = @transform_3, window_bounds = array<i64: 1, 8, 32>}, {transform_indices = @transform_4, window_bounds = array<i64: 1, 8, 32>}, {transform_indices = @transform_5, window_bounds = array<i64: 1, 3, 8, 32>}]} {
    %c0 = arith.constant 0 : index
    %c0_0 = arith.constant 0 : index
    %0 = vector.load %arg1[%c0, %c0_0] : memref<1x32xf32, #tpu.memory_space<vmem>>, vector<1x32xf32>
    %c0_1 = arith.constant 0 : index
    %1 = memref.load %arg2[%c0_1] : memref<1xf32, #tpu.memory_space<smem>>
    %c0_2 = arith.constant 0 : index
    %c0_3 = arith.constant 0 : index
    %c0_4 = arith.constant 0 : index
    %2 = vector.load %arg3[%c0_2, %c0_3, %c0_4] : memref<1x8x32xf32, #tpu.memory_space<vmem>>, vector<1x8x32xf32>
    %3 = vector.shape_cast %0 : vector<1x32xf32> to vector<1x1x32xf32>
    %4 = vector.broadcast %3 : vector<1x1x32xf32> to vector<1x8x32xf32>
    %5 = arith.mulf %2, %4 : vector<1x8x32xf32>
    %cst = arith.constant dense<0.000000e+00> : vector<1x8xf32>
    %6 = vector.multi_reduction <add>, %5, %cst [2] : vector<1x8x32xf32> to vector<1x8xf32>
    %7 = vector.shape_cast %6 : vector<1x8xf32> to vector<1x8x1xf32>
    %8 = vector.broadcast %1 : f32 to vector<1x8x1xf32>
    %9 = arith.addf %7, %8 : vector<1x8x1xf32>
    %cst_5 = arith.constant dense<0xFF800000> : vector<1x1xf32>
    %10 = vector.multi_reduction <maximumf>, %9, %cst_5 [1] : vector<1x8x1xf32> to vector<1x1xf32>
    %11 = vector.shape_cast %10 : vector<1x1xf32> to vector<1x1x1xf32>
    %12 = vector.broadcast %11 : vector<1x1x1xf32> to vector<1x8x1xf32>
    %13 = arith.subf %9, %12 : vector<1x8x1xf32>
    %14 = math.exp %13 : vector<1x8x1xf32>
    %cst_6 = arith.constant dense<0.000000e+00> : vector<1x1xf32>
    %15 = vector.multi_reduction <add>, %14, %cst_6 [1] : vector<1x8x1xf32> to vector<1x1xf32>
    %16 = vector.shape_cast %15 : vector<1x1xf32> to vector<1x1x1xf32>
    %17 = tpu.reciprocal %16 {approx = true} : vector<1x1x1xf32> -> vector<1x1x1xf32>
    %18 = vector.broadcast %17 : vector<1x1x1xf32> to vector<1x8x1xf32>
    %19 = arith.mulf %14, %18 : vector<1x8x1xf32>
    %20 = vector.broadcast %19 : vector<1x8x1xf32> to vector<1x8x32xf32>
    %21 = arith.mulf %2, %20 : vector<1x8x32xf32>
    %c0_7 = arith.constant 0 : index
    %c0_8 = arith.constant 0 : index
    %c0_9 = arith.constant 0 : index
    %c0_10 = arith.constant 0 : index
    %22 = vector.load %arg6[%c0_7, %c0_8, %c0_9, %c0_10] : memref<1x3x8x32xf32, #tpu.memory_space<vmem>>, vector<1x1x8x32xf32>
    %23 = vector.shape_cast %22 : vector<1x1x8x32xf32> to vector<1x8x32xf32>
    %24 = vector.shape_cast %21 : vector<1x8x32xf32> to vector<1x1x8x32xf32>
    tpu.vector_store %arg6[%c0_7, %c0_8, %c0_9, %c0_10], %24 {strides = array<i32>} : memref<1x3x8x32xf32, #tpu.memory_space<vmem>>, vector<1x1x8x32xf32>,
    %c0_11 = arith.constant 0 : index
    %c0_12 = arith.constant 0 : index
    %c0_13 = arith.constant 0 : index
    %25 = vector.load %arg4[%c0_11, %c0_12, %c0_13] : memref<1x8x32xf32, #tpu.memory_space<vmem>>, vector<1x8x32xf32>
    %26 = vector.shape_cast %0 : vector<1x32xf32> to vector<1x1x32xf32>
    %27 = vector.broadcast %26 : vector<1x1x32xf32> to vector<1x8x32xf32>
    %28 = arith.mulf %25, %27 : vector<1x8x32xf32>
    %cst_14 = arith.constant dense<0.000000e+00> : vector<1x8xf32>
    %29 = vector.multi_reduction <add>, %28, %cst_14 [2] : vector<1x8x32xf32> to vector<1x8xf32>
    %30 = vector.shape_cast %29 : vector<1x8xf32> to vector<1x8x1xf32>
    %31 = vector.broadcast %1 : f32 to vector<1x8x1xf32>
    %32 = arith.addf %30, %31 : vector<1x8x1xf32>
    %cst_15 = arith.constant dense<0xFF800000> : vector<1x1xf32>
    %33 = vector.multi_reduction <maximumf>, %32, %cst_15 [1] : vector<1x8x1xf32> to vector<1x1xf32>
    %34 = vector.shape_cast %33 : vector<1x1xf32> to vector<1x1x1xf32>
    %35 = vector.broadcast %34 : vector<1x1x1xf32> to vector<1x8x1xf32>
    %36 = arith.subf %32, %35 : vector<1x8x1xf32>
    %37 = math.exp %36 : vector<1x8x1xf32>
    %cst_16 = arith.constant dense<0.000000e+00> : vector<1x1xf32>
    %38 = vector.multi_reduction <add>, %37, %cst_16 [1] : vector<1x8x1xf32> to vector<1x1xf32>
    %39 = vector.shape_cast %38 : vector<1x1xf32> to vector<1x1x1xf32>
    %40 = tpu.reciprocal %39 {approx = true} : vector<1x1x1xf32> -> vector<1x1x1xf32>
    %41 = vector.broadcast %40 : vector<1x1x1xf32> to vector<1x8x1xf32>
    %42 = arith.mulf %37, %41 : vector<1x8x1xf32>
    %43 = vector.broadcast %42 : vector<1x8x1xf32> to vector<1x8x32xf32>
    %44 = arith.mulf %25, %43 : vector<1x8x32xf32>
    %c0_17 = arith.constant 0 : index
    %c1 = arith.constant 1 : index
    %c0_18 = arith.constant 0 : index
    %c0_19 = arith.constant 0 : index
    %45 = vector.load %arg6[%c0_17, %c1, %c0_18, %c0_19] : memref<1x3x8x32xf32, #tpu.memory_space<vmem>>, vector<1x1x8x32xf32>
    %46 = vector.shape_cast %45 : vector<1x1x8x32xf32> to vector<1x8x32xf32>
    %47 = vector.shape_cast %44 : vector<1x8x32xf32> to vector<1x1x8x32xf32>
    tpu.vector_store %arg6[%c0_17, %c1, %c0_18, %c0_19], %47 {strides = array<i32>} : memref<1x3x8x32xf32, #tpu.memory_space<vmem>>, vector<1x1x8x32xf32>,
    %c0_20 = arith.constant 0 : index
    %c0_21 = arith.constant 0 : index
    %c0_22 = arith.constant 0 : index
    %48 = vector.load %arg5[%c0_20, %c0_21, %c0_22] : memref<1x8x32xf32, #tpu.memory_space<vmem>>, vector<1x8x32xf32>
    %49 = vector.shape_cast %0 : vector<1x32xf32> to vector<1x1x32xf32>
    %50 = vector.broadcast %49 : vector<1x1x32xf32> to vector<1x8x32xf32>
    %51 = arith.mulf %48, %50 : vector<1x8x32xf32>
    %cst_23 = arith.constant dense<0.000000e+00> : vector<1x8xf32>
    %52 = vector.multi_reduction <add>, %51, %cst_23 [2] : vector<1x8x32xf32> to vector<1x8xf32>
    %53 = vector.shape_cast %52 : vector<1x8xf32> to vector<1x8x1xf32>
    %54 = vector.broadcast %1 : f32 to vector<1x8x1xf32>
    %55 = arith.addf %53, %54 : vector<1x8x1xf32>
    %cst_24 = arith.constant dense<0xFF800000> : vector<1x1xf32>
    %56 = vector.multi_reduction <maximumf>, %55, %cst_24 [1] : vector<1x8x1xf32> to vector<1x1xf32>
    %57 = vector.shape_cast %56 : vector<1x1xf32> to vector<1x1x1xf32>
    %58 = vector.broadcast %57 : vector<1x1x1xf32> to vector<1x8x1xf32>
    %59 = arith.subf %55, %58 : vector<1x8x1xf32>
    %60 = math.exp %59 : vector<1x8x1xf32>
    %cst_25 = arith.constant dense<0.000000e+00> : vector<1x1xf32>
    %61 = vector.multi_reduction <add>, %60, %cst_25 [1] : vector<1x8x1xf32> to vector<1x1xf32>
    %62 = vector.shape_cast %61 : vector<1x1xf32> to vector<1x1x1xf32>
    %63 = tpu.reciprocal %62 {approx = true} : vector<1x1x1xf32> -> vector<1x1x1xf32>
    %64 = vector.broadcast %63 : vector<1x1x1xf32> to vector<1x8x1xf32>
    %65 = arith.mulf %60, %64 : vector<1x8x1xf32>
    %66 = vector.broadcast %65 : vector<1x8x1xf32> to vector<1x8x32xf32>
    %67 = arith.mulf %48, %66 : vector<1x8x32xf32>
    %c0_26 = arith.constant 0 : index
    %c2 = arith.constant 2 : index
    %c0_27 = arith.constant 0 : index
    %c0_28 = arith.constant 0 : index
    %68 = vector.load %arg6[%c0_26, %c2, %c0_27, %c0_28] : memref<1x3x8x32xf32, #tpu.memory_space<vmem>>, vector<1x1x8x32xf32>
    %69 = vector.shape_cast %68 : vector<1x1x8x32xf32> to vector<1x8x32xf32>
    %70 = vector.shape_cast %67 : vector<1x8x32xf32> to vector<1x1x8x32xf32>
    tpu.vector_store %arg6[%c0_26, %c2, %c0_27, %c0_28], %70 {strides = array<i32>} : memref<1x3x8x32xf32, #tpu.memory_space<vmem>>, vector<1x1x8x32xf32>,
    return
  }
  func.func @transform_0(%arg0: i32) -> (i32, i32) {
    %c0_i32 = arith.constant 0 : i32
    %c0_i32_0 = arith.constant 0 : i32
    %c0_i32_1 = arith.constant 0 : i32
    return %c0_i32, %c0_i32_0 : i32, i32
  }
  func.func @transform_1(%arg0: i32) -> i32 {
    %c0_i32 = arith.constant 0 : i32
    %c0_i32_0 = arith.constant 0 : i32
    return %c0_i32 : i32
  }
  func.func @transform_2(%arg0: i32) -> (i32, i32, i32) {
    %c0_i32 = arith.constant 0 : i32
    %c0_i32_0 = arith.constant 0 : i32
    %c0_i32_1 = arith.constant 0 : i32
    return %arg0, %c0_i32, %c0_i32_0 : i32, i32, i32
  }
  func.func @transform_3(%arg0: i32) -> (i32, i32, i32) {
    %c0_i32 = arith.constant 0 : i32
    %c0_i32_0 = arith.constant 0 : i32
    %c0_i32_1 = arith.constant 0 : i32
    return %arg0, %c0_i32, %c0_i32_0 : i32, i32, i32
  }
  func.func @transform_4(%arg0: i32) -> (i32, i32, i32) {
    %c0_i32 = arith.constant 0 : i32
    %c0_i32_0 = arith.constant 0 : i32
    %c0_i32_1 = arith.constant 0 : i32
    return %arg0, %c0_i32, %c0_i32_0 : i32, i32, i32
  }
  func.func @transform_5(%arg0: i32) -> (i32, i32, i32, i32) {
    %c0_i32 = arith.constant 0 : i32
    %c0_i32_0 = arith.constant 0 : i32
    %c0_i32_1 = arith.constant 0 : i32
    %c0_i32_2 = arith.constant 0 : i32
    return %arg0, %c0_i32, %c0_i32_0, %c0_i32_1 : i32, i32, i32, i32
  }
}

</mosaic_0001>

<bundles_post_ra>
// kernel: attention_concatenation.1
= control target key start
LH: loop header
LB: loop body
LE: loop exit
PB: predicated region body
PF: predicated region fallthrough
CT: control target
= control target key end

     0   :  { %s1050_s0 = inlined_call_operand.vmem [shape: f32[1,32], index: 0, kind: input, shape index: {}]   ;;  %s1051_s1 = inlined_call_operand.<no memory space> [shape: f32[1], index: 1, kind: input, shape index: {}]   ;;  %s1052_s2 = inlined_call_operand.hbm [shape: f32[2,8,32], index: 2, kind: input, shape index: {}]   ;;  %s1053_s3 = inlined_call_operand.hbm [shape: f32[2,8,32], index: 3, kind: input, shape index: {}]   ;;  %s1054_s4 = inlined_call_operand.hbm [shape: f32[2,8,32], index: 4, kind: input, shape index: {}]   ;;  %s1055_s5 = inlined_call_operand.hbm [shape: f32[2,3,8,32], index: 5, kind: output, shape index: {}]  }
   0x1   :  { %1060 = sst [smem:[#allocation15_spill]] %s1052_s2 }
   0x2   :  { %1061 = sst [smem:[#allocation16_spill]] %s1053_s3 }
   0x3   :  { %10 = sst [smem:[#allocation2]] %s1051_s1 }
   0x4   :  { %11 = vsyncpa [#allocation4], 0 }
   0x5   :  { %13 = vsyncpa [#allocation4 + $0x1], 0 }
   0x6   :  { %14 = vsyncpa [#allocation7], 0 }
   0x7   :  { %16 = vsyncpa [#allocation7 + $0x1], 0 }
   0x8   :  { %17 = vsyncpa [#allocation5], 0 }
   0x9   :  { %19 = vsyncpa [#allocation5 + $0x1], 0  ;;  %s813_s20 = smov 0   ;;  %s815_s21 = smov 0  }
   0xa   :  { %s817_s22 = smov 0   ;;  %s819_s23 = smov 0  }
   0xb LB: > { %1062 = sst [smem:[#allocation13_spill]] %s768_s22  ;;  %s834_s1 = sadd.s32 4294967295, %s772_s23   ;;  %s772_s23 = sphi %s819_s23, %s1083_s23   ;;  %s768_s22 = sphi %s817_s22, %s1080_s22   ;;  %s764_s21 = sphi %s815_s21, %s1082_s21   ;;  %s760_s20 = sphi %s813_s20, %s1081_s20  }
   0xc   : > { %s529_s24 = sadd.s32 4294967294, %s772_s23   ;;  %s838_s25 = sadd.s32 1, %s772_s23  }
   0xd   : > { %s74_s26 = sadd.s32 1, %s768_s22  ;;  %s71_s27 = ssub.s32 %s772_s23, %s838_s25 }
   0xe   : > { %p81_p0 = scmp.ne.s32.totalorder %s768_s22, %s764_s21  ;;  %p72_p1 = scmp.eq.s32.totalorder %s71_s27, 0 }
   0xf   : > { %p82_p2 = scmp.eq.s32.totalorder %s772_s23, 0  ;;  %p87_p3 = scmp.ne.s32.totalorder %s764_s21, %s760_s20 }
  0x10   : > { %p88_p4 = scmp.eq.s32.totalorder %s834_s1, 0  ;;  %p163_p7 = scmp.eq.s32.totalorder %s834_s1, 1 }
  0x11   : > { %s850_s28 = scalar_select %p72_p1, %s768_s22, %s74_s26  }
  0x12   : > { %p83_p5 = por %p82_p2, %p81_p0  ;;  %p852_p6 = por %p88_p4, %p87_p3 }
  0x13   : > { %1063 = sst [smem:[#allocation14_spill]] %s850_s28  ;;  %p169_p8 = scmp.eq.s32.totalorder %s529_s24, 1 }
  0x14   : > { %s1064_s29 = scalar_select %p852_p6, 1, 0 }
  0x15   : > { %p572_p10 = scmp.lt.s32.totalorder %s772_s23, 2  ;;  %p859_p11 = por %p163_p7, %p81_p0 }
  0x16   : > { %p863_p12 = por %p169_p8, %p87_p3  ;;  %s1056_s7 = sand.u32 1, %s768_s22  }
  0x17   : > { %s1065_s30 = scalar_select %p859_p11, 1, 0 }
  0x18   : > { %s1066_s6 = scalar_select %p863_p12, 1, 0 }
  0x19   : > { %s869_s8 = sshll.u32 %s772_s23, 7  ;;  %s873_s9 = sshll.u32 %s1056_s7, 3 }
  0x1a   : > { %p875_p13 = pnand %p572_p10, %p83_p5  ;;  %s213_s11 = sand.u32 1, %s772_s23  }
  0x1b   : > { %s1068_s3 = sld [smem:[#allocation16_spill]]  ;;  %s217_s15 = scalar_lea.vmem [#allocation6], %s873_s9 }
  0x1c   : > { %s224_s16 = sshll.u32 %s217_s15, 4  ;;  %s888_s17 = scalar_lea.sflag [#allocation7], %s213_s11  ;;  %s225_s16 = int_to_ptr.vmem [resolvable:$true] %s224_s16 }
  0x1d   : > { %p894_p2 = pneg %p875_p13 }
  0x21   : > { %s884_s14 = scalar_lea.hbm %s1068_s3, %s869_s8  ;;  %s625_s27 = scalar_lea.hbm %s1068_s3, 256 }
  0x22   : > { %s620_s18 = scalar_lea.hbm %s884_s14, 128  ;;  %p626_p5 = scmp.lt.s32.totalorder %s884_s14, %s1068_s3 }
  0x23   : > { %p621_p1 = scmp.ne.s32.totalorder %s884_s14, %s620_s18  ;;  %p627_p7 = scmp.lt.s32.totalorder %s625_s27, %s620_s18 }
  0x25   : > { %p623_p3 = pnand %p894_p2, %p621_p1  ;;  %p628_p8 = por %p627_p7, %p626_p5 }
  0x27   : > { %p624_p4 = pneg %p623_p3 }
  0x29   : > { %p629_p10 = pnand %p628_p8, %p624_p4 }
  0x2b   : > { %632 = shalt.err (!%p629_p10)
}
  0x2c   : > { %s633_s11 = scalar_lea.vmem %s225_s16, 128  ;;  %s774_s15 = smov [#allocation6]  }
  0x2d   : > { %p634_p9 = scmp.ne.s32.totalorder %s225_s16, %s633_s11  ;;  %s638_s7 = sshll.u32 %s774_s15, 4  ;;  %s639_s7 = int_to_ptr.vmem [resolvable:$false] %s638_s7 }
  0x2e   : > { %s640_s28 = scalar_lea.vmem %s639_s7, 256  ;;  %p641_p1 = scmp.lt.s32.totalorder %s225_s16, %s639_s7 }
  0x2f   : > { %p636_p0 = pnand %p634_p9, %p894_p2  ;;  %p642_p3 = scmp.lt.s32.totalorder %s640_s28, %s633_s11 }
  0x31   : > { %p637_p12 = pneg %p636_p0  ;;  %p643_p11 = por %p642_p3, %p641_p1 }
  0x33   : > { %p644_p6 = pnand %p643_p11, %p637_p12 }
  0x35   : > { %647 = shalt.err (!%p644_p6)
}
  0x36   : > { %564 = dma.hbm_to_vmem [thread:$0]  (!%p875_p13), %s884_s14, 128, %s225_s16, %s888_s17  }
  0x37   : > { %p247_p9 = scmp.lt.s32.totalorder %s772_s23, 3  ;;  %s1070_s2 = sld [smem:[#allocation15_spill]] }
  0x38   : > { %p1071_p0 = scmp.ge.s32.totalorder %s772_s23, 1  ;;  %s199_s26 = scalar_lea.vmem [#allocation3], %s873_s9 }
  0x39   : > { %s206_s27 = sshll.u32 %s199_s26, 4  ;;  %s1073_s12 = sand.u32 1, %s768_s22   ;;  %s207_s27 = int_to_ptr.vmem [resolvable:$true] %s206_s27 }
  0x3a   : > { %p922_p6 = pnand %p1071_p0, %p247_p9  ;;  %s196_s13 = scalar_lea.sflag [#allocation4], %s1073_s12 }
  0x3c   : > { %s1072_s28 = scalar_select %p922_p6, 1, 0 }
  0x3d   : > { %s918_s7 = scalar_lea.hbm %s1070_s2, %s869_s8  ;;  %s653_s15 = scalar_lea.hbm %s1070_s2, 256 }
  0x3e   : > { %s648_s14 = scalar_lea.hbm %s918_s7, 128  ;;  %p654_p5 = scmp.lt.s32.totalorder %s918_s7, %s1070_s2 }
  0x3f   : > { %p649_p11 = scmp.ne.s32.totalorder %s918_s7, %s648_s14  ;;  %p655_p7 = scmp.lt.s32.totalorder %s653_s15, %s648_s14 }
  0x41   : > { %p651_p12 = pnand %p649_p11, %p894_p2  ;;  %p656_p8 = por %p655_p7, %p654_p5 }
  0x43   : > { %p652_p4 = pneg %p651_p12 }
  0x45   : > { %p657_p10 = pnand %p656_p8, %p652_p4 }
  0x47   : > { %660 = shalt.err (!%p657_p10)
}
  0x48   : > { %s661_s26 = scalar_lea.vmem %s207_s27, 128  ;;  %s775_s12 = smov [#allocation3]  }
  0x49   : > { %p662_p1 = scmp.ne.s32.totalorder %s207_s27, %s661_s26  ;;  %s666_s3 = sshll.u32 %s775_s12, 4  ;;  %s667_s3 = int_to_ptr.vmem [resolvable:$false] %s666_s3 }
  0x4a   : > { %s668_s22 = scalar_lea.vmem %s667_s3, 256  ;;  %p669_p0 = scmp.lt.s32.totalorder %s207_s27, %s667_s3 }
  0x4b   : > { %p664_p3 = pnand %p662_p1, %p894_p2  ;;  %p670_p11 = scmp.lt.s32.totalorder %s668_s22, %s661_s26 }
  0x4d   : > { %p665_p9 = pneg %p664_p3  ;;  %p671_p12 = por %p670_p11, %p669_p0 }
  0x4f   : > { %p672_p6 = pnand %p671_p12, %p665_p9 }
  0x51   : > { %675 = shalt.err (!%p672_p6)
}
  0x52   : > { %561 = dma.hbm_to_vmem [thread:$0]  (!%p875_p13), %s918_s7, 128, %s207_s27, %s196_s13  }
  0x53   : > { %s240_s11 = scalar_lea.hbm %s1054_s4, %s869_s8  ;;  %s235_s15 = scalar_lea.vmem [#allocation8], %s873_s9 }
  0x54   : > { %s242_s18 = sshll.u32 %s235_s15, 4  ;;  %s676_s24 = scalar_lea.hbm %s240_s11, 128  ;;  %s243_s18 = int_to_ptr.vmem [resolvable:$true] %s242_s18 }
  0x55   : > { %p677_p4 = scmp.ne.s32.totalorder %s240_s11, %s676_s24  ;;  %s681_s26 = scalar_lea.hbm %s1054_s4, 256 }
  0x56   : > { %p682_p6 = scmp.lt.s32.totalorder %s240_s11, %s1054_s4  ;;  %p683_p8 = scmp.lt.s32.totalorder %s681_s26, %s676_s24 }
  0x57   : > { %p679_p5 = pnand %p677_p4, %p894_p2 }
  0x58   : > { %p684_p10 = por %p683_p8, %p682_p6 }
  0x59   : > { %p680_p7 = pneg %p679_p5 }
  0x5b   : > { %p685_p1 = pnand %p684_p10, %p680_p7 }
  0x5d   : > { %688 = shalt.err (!%p685_p1)
}
  0x5e   : > { %s689_s8 = scalar_lea.vmem %s243_s18, 128  ;;  %s776_s9 = smov [#allocation8]  }
  0x5f   : > { %p690_p3 = scmp.ne.s32.totalorder %s243_s18, %s689_s8  ;;  %s694_s7 = sshll.u32 %s776_s9, 4  ;;  %s695_s7 = int_to_ptr.vmem [resolvable:$false] %s694_s7 }
  0x60   : > { %s696_s27 = scalar_lea.vmem %s695_s7, 256  ;;  %p697_p11 = scmp.lt.s32.totalorder %s243_s18, %s695_s7 }
  0x61   : > { %p692_p9 = pnand %p690_p3, %p894_p2  ;;  %p698_p12 = scmp.lt.s32.totalorder %s696_s27, %s689_s8 }
  0x63   : > { %p693_p0 = pneg %p692_p9  ;;  %p699_p4 = por %p698_p12, %p697_p11 }
  0x65   : > { %p700_p5 = pnand %p699_p4, %p693_p0 }
  0x67   : > { %703 = shalt.err (!%p700_p5)
}
  0x68   : > { %567 = dma.hbm_to_vmem [thread:$0]  (!%p875_p13), %s240_s11, 128, %s243_s18, %s888_s17  }
  0x69   : > { %p1074_p7 = scmp.ne.s32.totalorder %s1072_s28, 0 }
  0x6a   : > { %s966_s2 = sand.u32 (!%p1074_p7), 1, %s764_s21   ;;  %p1075_p2 = scmp.ne.s32.totalorder (!%p1074_p7), %s1064_s29, 0 }
  0x6b   : > { %251 = sbr.rel (%p1074_p7) target bundleno = 340 (0x154), region = 40  ;;  %s539_s19 = sshll.u32 (!%p1074_p7), %s966_s2, 3 }
  0x6c   : > { %s254_s13 = scalar_lea.sflag (!%p1074_p7), [#allocation4], %s966_s2  ;;  %s257_s14 = scalar_lea.vmem (!%p1074_p7), [#allocation3], %s539_s19 }
  0x70   : > { %747 = dma.done.wait (%p1075_p2), %s254_s13, 128  }
  0x71   : > { %749 = vsyncadd (%p1075_p2), %s254_s13, 4294967168  ;;  %s262_s10 = sand.u32 1, %s834_s1   ;;  %s266_s28 = scalar_lea.vmem [#allocation6], %s539_s19 }
  0x72   : > { %s263_s17 = scalar_lea.sflag [#allocation7], %s262_s10 }
  0x73   : > { %751 = dma.done.wait (%p1075_p2), %s263_s17, 256  }
  0x74   : > { %753 = vsyncadd (%p1075_p2), %s263_s17, 4294967040  ;;  %v542_v0 = vld [vmem:[%s1050_s0] ss:$0 sm:$0xff]  ;;  %vm322_vm0 = vcmask 261120   ;;  %s275_s15 = scalar_lea.vmem [#allocation8], %s539_s19  ;;  %v988_v5 = vld [vmem:[%s266_s28] sm:$0xff] }
  0x75   : > { %v982_v1 = vld [vmem:[%s275_s15] sm:$0xff]  ;;  %v348_v6 = vmul.f32 %v542_v0, %v988_v5  ;;  %s313_s29 = sld [smem:[#allocation2]]  ;;  %s548_s18 = smul.u32 24, %s966_s2 }
  0x76   : > { %v984_v2 = vld [vmem:[%s257_s14] sm:$0xff]  ;;  %v374_v3 = vmul.f32 %v542_v0, %v982_v1  ;;  %s549_s24 = smul.u32 384, %s834_s1  ;;  %s400_s1 = scalar_lea.sflag [#allocation5], %s966_s2 }
  0x77   : > { %v321_v4 = vmul.f32 %v542_v0, %v984_v2  ;;  %v349_v9 = vsel %vm322_vm0, %v348_v6, 0.0  ;;  %s311_s3 = scalar_lea.vmem [#allocation9], %s548_s18  ;;  %p1076_p6 = scmp.ne.s32.totalorder %s1065_s30, 0 }
  0x78   : > { %v375_v7 = vsel %vm322_vm0, %v374_v3, 0.0  ;;  %s413_s22 = sshll.u32 %s311_s3, 4  ;;  %s1003_s8 = scalar_lea.hbm %s1055_s5, %s549_s24  ;;  %s1005_s22 = int_to_ptr.vmem [resolvable:$true] %s413_s22 }
  0x79   : > { %v323_v8 = vsel %vm322_vm0, %v321_v4, 0.0  ;;  %376 = vadd.xlane.f32.xlu1 %v375_v7  ;;  %s704_s9 = scalar_lea.vmem %s1005_s22, 384  ;;  %s777_s7 = smov [#allocation9]  }
  0x7a   : > { %324 = vadd.xlane.f32.xlu0 %v323_v8  ;;  %p705_p13 = scmp.ne.s32.totalorder %s1005_s22, %s704_s9  ;;  %s708_s27 = sshll.u32 %s777_s7, 4  ;;  %s709_s27 = int_to_ptr.vmem [resolvable:$false] %s708_s27 }
  0x7b   : > { %v326_v10 = vstv %s313_s29  ;;  %s710_s19 = scalar_lea.vmem %s709_s27, 768  ;;  %p711_p1 = scmp.lt.s32.totalorder %s1005_s22, %s709_s27 }
  0x7c   : > { %p706_p8 = pnand %p705_p13, %p1076_p6  ;;  %p712_p3 = scmp.lt.s32.totalorder %s710_s19, %s704_s9 }
  0x7e   : > { %350 = vadd.xlane.f32.xlu0 %v349_v9  ;;  %p707_p10 = pneg %p706_p8  ;;  %p713_p9 = por %p712_p3, %p711_p1 }
  0x80   : > { %p714_p0 = pnand %p713_p9, %p707_p10 }
 0x102   : > { %v377_v11 = vpop.xlane.xlu1 %376 }
 0x103   : > { %v325_v12 = vpop.xlane.xlu0 %324  ;;  %v378_v13 = vadd.f32 %v377_v11, %v326_v10 }
 0x104   : > { %v327_v14 = vadd.f32 %v326_v10, %v325_v12 }
 0x105   : > { %v379_v15 = vrot.slane %v378_v13, 4 }
 0x106   : > { %v328_v16 = vrot.slane %v327_v14, 4 }
 0x107   : > { %v351_v17 = vpop.xlane.xlu0 %350  ;;  %v380_v18 = vmax.f32 %v378_v13, %v379_v15 }
 0x108   : > { %v329_v19 = vmax.f32 %v327_v14, %v328_v16  ;;  %v352_v20 = vadd.f32 %v351_v17, %v326_v10 }
 0x109   : > { %v381_v21 = vrot.slane %v380_v18, 2 }
 0x10a   : > { %v330_v22 = vrot.slane %v329_v19, 2  ;;  %v353_v23 = vrot.slane %v352_v20, 4 }
 0x10b   : > { %v382_v24 = vmax.f32 %v380_v18, %v381_v21 }
 0x10c   : > { %v331_v25 = vmax.f32 %v329_v19, %v330_v22  ;;  %v354_v26 = vmax.f32 %v352_v20, %v353_v23 }
 0x10d   : > { %v383_v27 = vrot.slane %v382_v24, 1 }
 0x10e   : > { %v332_v28 = vrot.slane %v331_v25, 1  ;;  %v355_v29 = vrot.slane %v354_v26, 2 }
 0x10f   : > { %v384_v30 = vmax.f32 %v382_v24, %v383_v27 }
 0x110   : > { %v333_v31 = vmax.f32 %v331_v25, %v332_v28  ;;  %v356_v32 = vmax.f32 %v354_v26, %v355_v29 }
 0x111   : > { %v385_v33 = vsub.f32 %v378_v13, %v384_v30 }
 0x112   : > { %v334_v34 = vsub.f32 %v327_v14, %v333_v31  ;;  %v357_v35 = vrot.slane %v356_v32, 1 }
 0x113   : > { %v386_v36 = vmul.f32 1.442695, %v385_v33 }
 0x114   : > { %v335_v37 = vmul.f32 1.442695, %v334_v34  ;;  %v358_v38 = vmax.f32 %v356_v32, %v357_v35 }
 0x115   : > { %608 = vpow2.f32 %v386_v36 }
 0x116   : > { %v359_v39 = vsub.f32 %v352_v20, %v358_v38  ;;  %610 = vpow2.f32 %v335_v37 }
 0x118   : > { %v360_v40 = vmul.f32 1.442695, %v359_v39 }
 0x11a   : > { %612 = vpow2.f32 %v360_v40 }
 0x122   : > { %v609_v41 = vpop.eup %608 }
 0x123   : > { %v611_v42 = vpop.eup %610  ;;  %v388_v43 = vrot.slane %v609_v41, 4 }
 0x124   : > { %v337_v44 = vrot.slane %v611_v42, 4 }
 0x125   : > { %v389_v45 = vadd.f32 %v609_v41, %v388_v43 }
 0x126   : > { %v338_v47 = vadd.f32 %v611_v42, %v337_v44 }
 0x127   : > { %v613_v46 = vpop.eup %612  ;;  %v390_v48 = vrot.slane %v389_v45, 2 }
 0x128   : > { %v362_v49 = vrot.slane %v613_v46, 4  ;;  %v339_v50 = vrot.slane %v338_v47, 2 }
 0x129   : > { %v391_v51 = vadd.f32 %v390_v48, %v389_v45 }
 0x12a   : > { %v363_v52 = vadd.f32 %v613_v46, %v362_v49  ;;  %v340_v53 = vadd.f32 %v339_v50, %v338_v47 }
 0x12b   : > { %v392_v54 = vrot.slane %v391_v51, 1 }
 0x12c   : > { %v364_v55 = vrot.slane %v363_v52, 2  ;;  %v341_v56 = vrot.slane %v340_v53, 1 }
 0x12d   : > { %v393_v57 = vadd.f32 %v392_v54, %v391_v51 }
 0x12e   : > { %v365_v58 = vadd.f32 %v364_v55, %v363_v52  ;;  %v342_v59 = vadd.f32 %v341_v56, %v340_v53 }
 0x12f   : > { %614 = vrcp.f32 %v393_v57 }
 0x130   : > { %v366_v60 = vrot.slane %v365_v58, 1  ;;  %616 = vrcp.f32 %v342_v59 }
 0x132   : > { %v367_v61 = vadd.f32 %v366_v60, %v365_v58 }
 0x134   : > { %618 = vrcp.f32 %v367_v61 }
 0x13c   : > { %v615_v62 = vpop.eup %614 }
 0x13d   : > { %v617_v63 = vpop.eup %616  ;;  %v395_v0 = vmul.f32 %v615_v62, %v609_v41 }
 0x13e   : > { %v344_v3 = vmul.f32 %v617_v63, %v611_v42 }
 0x13f   : > { %v396_v4 = vmul.f32 %v395_v0, %v982_v1 }
 0x140   : > { %v345_v7 = vmul.f32 %v344_v3, %v984_v2 }
 0x141   : > { %v619_v6 = vpop.eup %618  ;;  %544 = vst.msk [vmem:[%s311_s3 + $0x10] sm:$0xff] %vm322_vm0, %v396_v4 }
 0x142   : > { %v369_v8 = vmul.f32 %v619_v6, %v613_v46  ;;  %346 = vst.msk [vmem:[%s311_s3] sm:$0xff] %vm322_vm0, %v345_v7 }
 0x144   : > { %v370_v1 = vmul.f32 %v369_v8, %v988_v5 }
 0x146   : > { %543 = vst.msk [vmem:[%s311_s3 + $0x8] sm:$0xff] %vm322_vm0, %v370_v1 }
 0x147   : > { %717 = shalt.err (!%p714_p0)
}
 0x148   : > { %s718_s13 = scalar_lea.hbm %s1003_s8, 384  ;;  %s722_s17 = scalar_lea.hbm %s1055_s5, 768 }
 0x149   : > { %p719_p11 = scmp.ne.s32.totalorder %s1003_s8, %s718_s13  ;;  %p723_p5 = scmp.lt.s32.totalorder %s1003_s8, %s1055_s5 }
 0x14a   : > { %p724_p7 = scmp.lt.s32.totalorder %s722_s17, %s718_s13 }
 0x14b   : > { %p720_p12 = pnand %p719_p11, %p1076_p6 }
 0x14c   : > { %p725_p2 = por %p724_p7, %p723_p5 }
 0x14d   : > { %p721_p4 = pneg %p720_p12 }
 0x14f   : > { %p726_p13 = pnand %p725_p2, %p721_p4 }
 0x151   : > { %729 = shalt.err (!%p726_p13)
}
 0x152   : > { %s778_s11 = smov 128   ;;  %s779_s15 = smov 8  }
 0x153   : > { %556 = dma.vmem_to_hbm [thread:$0]  (%p1076_p6), %s1005_s22, 384, %s1003_s8, %s400_s1, %s778_s11, %s778_s11, %s779_s15  }
 0x154 PF: > { %s428_s29 = sand.u32 1, %s760_s20   ;;  %p1077_p8 = scmp.ne.s32.totalorder %s1066_s6, 0 }
 0x155   : > { %p1078_p10 = scmp.ge.s32.totalorder %s772_s23, 2  ;;  %s429_s18 = scalar_lea.sflag [#allocation5], %s428_s29 }
 0x157   : > { %p569_p1 = pnand %p1078_p10, %p1077_p8 }
 0x159   : > { %p570_p3 = pneg %p569_p1 }
 0x15b   : > { %755 = dma.done.wait (%p570_p3), %s429_s18, 384  }
 0x15c   : > { %757 = vsyncadd (%p570_p3), %s429_s18, 4294966912  ;;  %s1079_s24 = sld [smem:[#allocation13_spill]]  ;;  %p22_p9 = scmp.ge.s32.totalorder %s838_s25, 4  }
 0x15d   : > { %s1080_s22 = sld [smem:[#allocation14_spill]]  ;;  %s1081_s20 = smov %s764_s21 }
 0x15e   : > { %s1083_s23 = smov %s838_s25  ;;  %24 = sbr.rel (!%p22_p9) target bundleno = 11 (0xb), region = 111 }
 0x162   : > { %s1082_s21 = smov %s1079_s24 }
 0x163   :  { %434 = vsyncpa [#allocation4], 1 }
 0x164   :  { %436 = vsyncpa [#allocation4 + $0x1], 1 }
 0x165   :  { %437 = vsyncpa [#allocation7], 1 }
 0x166   :  { %439 = vsyncpa [#allocation7 + $0x1], 1 }
 0x167   :  { %440 = vsyncpa [#allocation5], 1 }
 0x168   :  { %442 = vsyncpa [#allocation5 + $0x1], 1 }

</bundles_post_ra>
